<compile_context>
chip_gen: v7x
topology: tpu7x:2x2x1
jax: 0.10.0
libtpu: 0.0.40
codegen_flags: <defaults>
</compile_context>

<pallas_src>
import jax
import jax.numpy as jnp
from jax.experimental import pallas as pl
from jax.experimental.pallas import tpu as pltpu


# ------------------------------ Pallas kernel -------------------------------

def _importance_kernel(idx_ref, x_ref, nt_ref, mask_ref,
                       emb_ref, w1x_ref, w1e_ref, w1t_ref, b1_ref,
                       w2_ref, b2_ref, wo_ref, bo_ref,
                       out_ref):
    tile = idx_ref.shape[1]          # nodes in this step (lanes)
    n_emb = emb_ref.shape[1]         # embedding table rows

    # Fused embedding gather: one-hot(node_idx) through the MXU against the
    # resident table -> (node_bias_size, tile).  Exact selection, so the bf16
    # round-trip only reproduces the bf16 table values.
    onehot = (jax.lax.broadcasted_iota(jnp.int32, (n_emb, tile), 0)
              == idx_ref[...]).astype(jnp.bfloat16)
    nb = jnp.dot(emb_ref[...], onehot,
                 preferred_element_type=jnp.float32).astype(jnp.bfloat16)

    # Layer 1: tanh(W1 @ [x; emb; nodetype] + b1); concat folded into 3 matmuls.
    z1 = (jnp.dot(w1x_ref[...], x_ref[...], preferred_element_type=jnp.float32)
          + jnp.dot(w1e_ref[...], nb, preferred_element_type=jnp.float32)
          + jnp.dot(w1t_ref[...], nt_ref[...], preferred_element_type=jnp.float32)
          + b1_ref[...])
    h = jnp.tanh(z1).astype(jnp.bfloat16)                           # (h_dim, tile)

    # Layer 2: tanh(W2 @ h + b2)
    z2 = jnp.dot(w2_ref[...], h, preferred_element_type=jnp.float32) + b2_ref[...]
    h = jnp.tanh(z2).astype(jnp.bfloat16)                           # (h_dim, tile)

    # Output head: (1, h_dim) @ (h_dim, tile) -> lane-dense (1, tile).
    o = jnp.dot(wo_ref[...], h, preferred_element_type=jnp.float32) + bo_ref[...]

    # 'sigout' architecture + 'naive' masking.
    out_ref[...] = jax.nn.sigmoid(o) * mask_ref[...]


# --------------------------------- wrapper ----------------------------------

def _round_up(v, m):
    return ((v + m - 1) // m) * m


def prepare_kernel_params(params, state_dim, node_bias_size):
    """Canonical f32 params -> kernel layout: transposed, bf16 weights, f32 biases."""
    w1, b1 = params["w1"], params["b1"]        # (in_dim, h), (h,)
    w2, b2 = params["w2"], params["b2"]        # (h, h),      (h,)
    wo, bo = params["wo"], params["bo"]        # (h, 1),      (1,)
    emb = params["embedding"]                  # (n_total_nodes, node_bias_size)
    s, e = state_dim, state_dim + node_bias_size
    return dict(
        w1x_t=w1[:s].T.astype(jnp.bfloat16),       # (h, state_dim)
        w1e_t=w1[s:e].T.astype(jnp.bfloat16),      # (h, node_bias_size)
        w1t_t=w1[e:].T.astype(jnp.bfloat16),       # (h, 2)
        b1=b1[:, None].astype(jnp.float32),        # (h, 1)
        w2_t=w2.T.astype(jnp.bfloat16),            # (h, h)
        b2=b2[:, None].astype(jnp.float32),        # (h, 1)
        wo_t=wo.T.astype(jnp.bfloat16),            # (1, h)
        bo=bo[None, :].astype(jnp.float32),        # (1, 1)
        emb_t=emb.T.astype(jnp.bfloat16),          # (node_bias_size, n_total_nodes)
    )


def importance_net_forward(x, node_input, nodetype_input, mask, kparams,
                           *, max_tile_n=2048):
    """x:(N,state) f32, node_input:(N,) int, nodetype_input:(N,2), mask:(N,) -> (N,1) f32."""
    n, state_dim = x.shape
    h_dim = kparams["w2_t"].shape[0]
    nbs, n_emb = kparams["emb_t"].shape

    # Tile N along lanes; pad N up to a multiple of the tile.
    tile = min(max_tile_n, _round_up(max(n, 1), 128))
    n_pad = _round_up(n, tile)
    pad = n_pad - n

    # Transposed, bf16 activation layout: nodes -> lanes (layout plumbing only).
    x_t = jnp.pad(x, ((0, pad), (0, 0))).astype(jnp.bfloat16).T               # (state, n_pad)
    nt_t = jnp.pad(nodetype_input, ((0, pad), (0, 0))).astype(jnp.bfloat16).T  # (2, n_pad)
    idx = jnp.pad(node_input.astype(jnp.int32), (0, pad))[None, :]             # (1, n_pad)
    mask_r = jnp.pad(mask.astype(jnp.float32), (0, pad))[None, :]              # (1, n_pad)

    grid = (n_pad // tile,)

    def lanes(rows):            # streamed activation tiles, nodes on lanes
        return pl.BlockSpec((rows, tile), lambda i: (0, i))

    def resident(shape):        # weights/biases, stay VMEM-resident across steps
        return pl.BlockSpec(shape, lambda i: (0, 0))

    in_specs = [
        lanes(1),                                  # node indices (int32)
        lanes(state_dim),                          # x^T
        lanes(2),                                  # nodetype^T
        lanes(1),                                  # mask
        resident(kparams["emb_t"].shape),
        resident(kparams["w1x_t"].shape),
        resident(kparams["w1e_t"].shape),
        resident(kparams["w1t_t"].shape),
        resident(kparams["b1"].shape),
        resident(kparams["w2_t"].shape),
        resident(kparams["b2"].shape),
        resident(kparams["wo_t"].shape),
        resident(kparams["bo"].shape),
    ]

    # Advisory scheduling hint for XLA.
    flops = n_pad * 2 * (h_dim * (state_dim + nbs + 2 + h_dim + 1) + nbs * n_emb)
    bytes_accessed = n_pad * (2 * state_dim + 2 * 2 + 4 + 4 + 4)   # bf16 x/nt, i32 idx, f32 mask/out
    cost = pl.CostEstimate(flops=int(flops),
                           transcendentals=int(n_pad * (2 * h_dim + 1)),
                           bytes_accessed=int(bytes_accessed))

    out_row = pl.pallas_call(
        _importance_kernel,
        out_shape=jax.ShapeDtypeStruct((1, n_pad), jnp.float32),
        grid=grid,
        in_specs=in_specs,
        out_specs=lanes(1),
        compiler_params=pltpu.CompilerParams(dimension_semantics=("parallel",)),
        cost_estimate=cost,
    )(idx, x_t, nt_t, mask_r,
      kparams["emb_t"], kparams["w1x_t"], kparams["w1e_t"], kparams["w1t_t"],
      kparams["b1"], kparams["w2_t"], kparams["b2"], kparams["wo_t"], kparams["bo"])

    return out_row[0, :n][:, None]                                   # (N, 1)


# ----------------------- deterministic parameter init -----------------------

def init_params(key, n_total_nodes, state_dim, node_bias_size, h_dim):
    in_dim = state_dim + node_bias_size + 2   # + nodetypes
    keys = jax.random.split(key, 7)

    def linear(kw, kb, fan_in, fan_out):
        # nn.Linear-style uniform init; stored pre-transposed as (in, out).
        bound = 1.0 / jnp.sqrt(fan_in)
        w = jax.random.uniform(kw, (fan_in, fan_out), jnp.float32, -bound, bound)
        b = jax.random.uniform(kb, (fan_out,), jnp.float32, -bound, bound)
        return w, b

    w1, b1 = linear(keys[0], keys[1], in_dim, h_dim)
    w2, b2 = linear(keys[2], keys[3], h_dim, h_dim)
    wo, bo = linear(keys[4], keys[5], h_dim, 1)
    embedding = jax.random.normal(keys[6], (n_total_nodes, node_bias_size), jnp.float32)
    return {"w1": w1, "b1": b1, "w2": w2, "b2": b2, "wo": wo, "bo": bo,
            "embedding": embedding}


# ------------------------------------ main -----------------------------------

if __name__ == "__main__":
    N = 8                 # nodes in the (sub)graph batch
    STATE_DIM = 32        # opt.state_dim
    NODE_BIAS = 8         # opt.node_bias_size
    H_DIM = 32            # opt.importance_out_net_h_size
    N_TOTAL_NODES = 16    # embedding table rows

    root = jax.random.PRNGKey(0)
    k_param, k_x, k_node, k_type, k_mask = jax.random.split(root, 5)

    params = init_params(k_param, N_TOTAL_NODES, STATE_DIM, NODE_BIAS, H_DIM)
    kparams = prepare_kernel_params(params, STATE_DIM, NODE_BIAS)

    x = jax.random.normal(k_x, (N, STATE_DIM), jnp.float32)
    node_input = jax.random.randint(k_node, (N,), 0, N_TOTAL_NODES, jnp.int32)
    type_idx = jax.random.randint(k_type, (N,), 0, 2, jnp.int32)
    nodetype_input = jax.nn.one_hot(type_idx, 2, dtype=jnp.float32)
    mask = (jax.random.uniform(k_mask, (N,)) > 0.5).astype(jnp.float32)

    out = importance_net_forward(x, node_input, nodetype_input, mask, kparams)
    out = jax.block_until_ready(out)

    # f32 reference (same math as the PyTorch module).
    joined = jnp.concatenate(
        [x, jnp.take(params["embedding"], node_input, axis=0), nodetype_input], axis=-1)
    h = jnp.tanh(joined @ params["w1"] + params["b1"])
    h = jnp.tanh(h @ params["w2"] + params["b2"])
    ref = jax.nn.sigmoid(h @ params["wo"] + params["bo"]) * mask[:, None]

    assert out.shape == (N, 1)
    max_err = float(jnp.max(jnp.abs(out - ref)))
    assert jnp.allclose(out, ref, atol=3e-2, rtol=3e-2), f"mismatch vs reference (max err {max_err})"

    print("KERNEL_OK")
</pallas_src>

<mosaic_0001>
module attributes {stable_mosaic.version = 11 : i64} {
  func.func @_importance_kernel(%arg0: i32, %arg1: memref<1x128xi32, #tpu.memory_space<vmem>>, %arg2: memref<32x128xbf16, #tpu.memory_space<vmem>>, %arg3: memref<2x128xbf16, #tpu.memory_space<vmem>>, %arg4: memref<1x128xf32, #tpu.memory_space<vmem>>, %arg5: memref<8x16xbf16, #tpu.memory_space<vmem>>, %arg6: memref<32x32xbf16, #tpu.memory_space<vmem>>, %arg7: memref<32x8xbf16, #tpu.memory_space<vmem>>, %arg8: memref<32x2xbf16, #tpu.memory_space<vmem>>, %arg9: memref<32x1xf32, #tpu.memory_space<vmem>>, %arg10: memref<32x32xbf16, #tpu.memory_space<vmem>>, %arg11: memref<32x1xf32, #tpu.memory_space<vmem>>, %arg12: memref<1x32xbf16, #tpu.memory_space<vmem>>, %arg13: memref<1x1xf32, #tpu.memory_space<vmem>>, %arg14: memref<1x128xf32, #tpu.memory_space<vmem>>) attributes {dimension_semantics = [#tpu.dimension_semantics<parallel>], iteration_bounds = array<i64: 1>, scalar_prefetch = 0 : i64, scratch_operands = 0 : i64, tpu.core_type = #tpu.core_type<tc>, window_params = [{transform_indices = @transform_0, window_bounds = array<i64: 1, 128>}, {transform_indices = @transform_1, window_bounds = array<i64: 32, 128>}, {transform_indices = @transform_2, window_bounds = array<i64: 2, 128>}, {transform_indices = @transform_3, window_bounds = array<i64: 1, 128>}, {pipeline_mode = #tpu.pipeline_mode<synchronous>, transform_indices = @transform_4, window_bounds = array<i64: 8, 16>}, {pipeline_mode = #tpu.pipeline_mode<synchronous>, transform_indices = @transform_5, window_bounds = array<i64: 32, 32>}, {pipeline_mode = #tpu.pipeline_mode<synchronous>, transform_indices = @transform_6, window_bounds = array<i64: 32, 8>}, {pipeline_mode = #tpu.pipeline_mode<synchronous>, transform_indices = @transform_7, window_bounds = array<i64: 32, 2>}, {pipeline_mode = #tpu.pipeline_mode<synchronous>, transform_indices = @transform_8, window_bounds = array<i64: 32, 1>}, {pipeline_mode = #tpu.pipeline_mode<synchronous>, transform_indices = @transform_9, window_bounds = array<i64: 32, 32>}, {pipeline_mode = #tpu.pipeline_mode<synchronous>, transform_indices = @transform_10, window_bounds = array<i64: 32, 1>}, {pipeline_mode = #tpu.pipeline_mode<synchronous>, transform_indices = @transform_11, window_bounds = array<i64: 1, 32>}, {pipeline_mode = #tpu.pipeline_mode<synchronous>, transform_indices = @transform_12, window_bounds = array<i64: 1, 1>}, {transform_indices = @transform_13, window_bounds = array<i64: 1, 128>}]} {
    %0 = tpu.iota {dimensions = array<i32: 0>} : vector<16x128xi32>
    %c0 = arith.constant 0 : index
    %c0_0 = arith.constant 0 : index
    %1 = vector.load %arg1[%c0, %c0_0] : memref<1x128xi32, #tpu.memory_space<vmem>>, vector<1x128xi32>
    %2 = vector.broadcast %1 : vector<1x128xi32> to vector<16x128xi32>
    %3 = arith.cmpi eq, %0, %2 : vector<16x128xi32>
    %4 = arith.extui %3 : vector<16x128xi1> to vector<16x128xi32>
    %5 = arith.sitofp %4 : vector<16x128xi32> to vector<16x128xf32>
    %6 = arith.truncf %5 : vector<16x128xf32> to vector<16x128xbf16>
    %c0_1 = arith.constant 0 : index
    %c0_2 = arith.constant 0 : index
    %7 = vector.load %arg5[%c0_1, %c0_2] : memref<8x16xbf16, #tpu.memory_space<vmem>>, vector<8x16xbf16>
    %cst = arith.constant dense<0.000000e+00> : vector<8x128xf32>
    %8 = tpu.matmul %7, %6, %cst {dimension_numbers = #tpu.dot_dimension_numbers<[1], [0], [0], [1], [0, 0, 1, 1], [], []>} : vector<8x16xbf16>, vector<16x128xbf16>, vector<8x128xf32> -> vector<8x128xf32>
    %9 = arith.truncf %8 : vector<8x128xf32> to vector<8x128xbf16>
    %c0_3 = arith.constant 0 : index
    %c0_4 = arith.constant 0 : index
    %10 = vector.load %arg6[%c0_3, %c0_4] : memref<32x32xbf16, #tpu.memory_space<vmem>>, vector<32x32xbf16>
    %c0_5 = arith.constant 0 : index
    %c0_6 = arith.constant 0 : index
    %11 = vector.load %arg2[%c0_5, %c0_6] : memref<32x128xbf16, #tpu.memory_space<vmem>>, vector<32x128xbf16>
    %cst_7 = arith.constant dense<0.000000e+00> : vector<32x128xf32>
    %12 = tpu.matmul %10, %11, %cst_7 {dimension_numbers = #tpu.dot_dimension_numbers<[1], [0], [0], [1], [0, 0, 1, 1], [], []>} : vector<32x32xbf16>, vector<32x128xbf16>, vector<32x128xf32> -> vector<32x128xf32>
    %c0_8 = arith.constant 0 : index
    %c0_9 = arith.constant 0 : index
    %13 = vector.load %arg7[%c0_8, %c0_9] : memref<32x8xbf16, #tpu.memory_space<vmem>>, vector<32x8xbf16>
    %cst_10 = arith.constant dense<0.000000e+00> : vector<32x128xf32>
    %14 = tpu.matmul %13, %9, %cst_10 {dimension_numbers = #tpu.dot_dimension_numbers<[1], [0], [0], [1], [0, 0, 1, 1], [], []>} : vector<32x8xbf16>, vector<8x128xbf16>, vector<32x128xf32> -> vector<32x128xf32>
    %15 = arith.addf %12, %14 : vector<32x128xf32>
    %c0_11 = arith.constant 0 : index
    %c0_12 = arith.constant 0 : index
    %16 = vector.load %arg8[%c0_11, %c0_12] : memref<32x2xbf16, #tpu.memory_space<vmem>>, vector<32x2xbf16>
    %c0_13 = arith.constant 0 : index
    %c0_14 = arith.constant 0 : index
    %17 = vector.load %arg3[%c0_13, %c0_14] : memref<2x128xbf16, #tpu.memory_space<vmem>>, vector<2x128xbf16>
    %cst_15 = arith.constant dense<0.000000e+00> : vector<32x128xf32>
    %18 = tpu.matmul %16, %17, %cst_15 {dimension_numbers = #tpu.dot_dimension_numbers<[1], [0], [0], [1], [0, 0, 1, 1], [], []>} : vector<32x2xbf16>, vector<2x128xbf16>, vector<32x128xf32> -> vector<32x128xf32>
    %19 = arith.addf %15, %18 : vector<32x128xf32>
    %c0_16 = arith.constant 0 : index
    %c0_17 = arith.constant 0 : index
    %20 = vector.load %arg9[%c0_16, %c0_17] : memref<32x1xf32, #tpu.memory_space<vmem>>, vector<32x1xf32>
    %21 = vector.broadcast %20 : vector<32x1xf32> to vector<32x128xf32>
    %22 = arith.addf %19, %21 : vector<32x128xf32>
    %23 = math.tanh %22 : vector<32x128xf32>
    %24 = arith.truncf %23 : vector<32x128xf32> to vector<32x128xbf16>
    %c0_18 = arith.constant 0 : index
    %c0_19 = arith.constant 0 : index
    %25 = vector.load %arg10[%c0_18, %c0_19] : memref<32x32xbf16, #tpu.memory_space<vmem>>, vector<32x32xbf16>
    %cst_20 = arith.constant dense<0.000000e+00> : vector<32x128xf32>
    %26 = tpu.matmul %25, %24, %cst_20 {dimension_numbers = #tpu.dot_dimension_numbers<[1], [0], [0], [1], [0, 0, 1, 1], [], []>} : vector<32x32xbf16>, vector<32x128xbf16>, vector<32x128xf32> -> vector<32x128xf32>
    %c0_21 = arith.constant 0 : index
    %c0_22 = arith.constant 0 : index
    %27 = vector.load %arg11[%c0_21, %c0_22] : memref<32x1xf32, #tpu.memory_space<vmem>>, vector<32x1xf32>
    %28 = vector.broadcast %27 : vector<32x1xf32> to vector<32x128xf32>
    %29 = arith.addf %26, %28 : vector<32x128xf32>
    %30 = math.tanh %29 : vector<32x128xf32>
    %31 = arith.truncf %30 : vector<32x128xf32> to vector<32x128xbf16>
    %c0_23 = arith.constant 0 : index
    %c0_24 = arith.constant 0 : index
    %32 = vector.load %arg12[%c0_23, %c0_24] : memref<1x32xbf16, #tpu.memory_space<vmem>>, vector<1x32xbf16>
    %cst_25 = arith.constant dense<0.000000e+00> : vector<1x128xf32>
    %33 = tpu.matmul %32, %31, %cst_25 {dimension_numbers = #tpu.dot_dimension_numbers<[1], [0], [0], [1], [0, 0, 1, 1], [], []>} : vector<1x32xbf16>, vector<32x128xbf16>, vector<1x128xf32> -> vector<1x128xf32>
    %c0_26 = arith.constant 0 : index
    %c0_27 = arith.constant 0 : index
    %34 = vector.load %arg13[%c0_26, %c0_27] : memref<1x1xf32, #tpu.memory_space<vmem>>, vector<1x1xf32>
    %35 = vector.broadcast %34 : vector<1x1xf32> to vector<1x128xf32>
    %36 = arith.addf %33, %35 : vector<1x128xf32>
    %37 = arith.negf %36 : vector<1x128xf32>
    %38 = math.exp %37 : vector<1x128xf32>
    %cst_28 = arith.constant 1.000000e+00 : f32
    %39 = vector.broadcast %cst_28 : f32 to vector<1x128xf32>
    %40 = arith.addf %39, %38 : vector<1x128xf32>
    %41 = arith.divf %39, %40 : vector<1x128xf32>
    %c0_29 = arith.constant 0 : index
    %c0_30 = arith.constant 0 : index
    %42 = vector.load %arg4[%c0_29, %c0_30] : memref<1x128xf32, #tpu.memory_space<vmem>>, vector<1x128xf32>
    %43 = arith.mulf %41, %42 : vector<1x128xf32>
    %c0_31 = arith.constant 0 : index
    %c0_32 = arith.constant 0 : index
    %44 = vector.load %arg14[%c0_31, %c0_32] : memref<1x128xf32, #tpu.memory_space<vmem>>, vector<1x128xf32>
    tpu.vector_store %arg14[%c0_31, %c0_32], %43 {strides = array<i32>} : memref<1x128xf32, #tpu.memory_space<vmem>>, vector<1x128xf32>,
    return
  }
  func.func @transform_0(%arg0: i32) -> (i32, i32) {
    %c0_i32 = arith.constant 0 : i32
    %c0_i32_0 = arith.constant 0 : i32
    return %c0_i32, %arg0 : i32, i32
  }
  func.func @transform_1(%arg0: i32) -> (i32, i32) {
    %c0_i32 = arith.constant 0 : i32
    %c0_i32_0 = arith.constant 0 : i32
    return %c0_i32, %arg0 : i32, i32
  }
  func.func @transform_2(%arg0: i32) -> (i32, i32) {
    %c0_i32 = arith.constant 0 : i32
    %c0_i32_0 = arith.constant 0 : i32
    return %c0_i32, %arg0 : i32, i32
  }
  func.func @transform_3(%arg0: i32) -> (i32, i32) {
    %c0_i32 = arith.constant 0 : i32
    %c0_i32_0 = arith.constant 0 : i32
    return %c0_i32, %arg0 : i32, i32
  }
  func.func @transform_4(%arg0: i32) -> (i32, i32) {
    %c0_i32 = arith.constant 0 : i32
    %c0_i32_0 = arith.constant 0 : i32
    %c0_i32_1 = arith.constant 0 : i32
    return %c0_i32, %c0_i32_0 : i32, i32
  }
  func.func @transform_5(%arg0: i32) -> (i32, i32) {
    %c0_i32 = arith.constant 0 : i32
    %c0_i32_0 = arith.constant 0 : i32
    %c0_i32_1 = arith.constant 0 : i32
    return %c0_i32, %c0_i32_0 : i32, i32
  }
  func.func @transform_6(%arg0: i32) -> (i32, i32) {
    %c0_i32 = arith.constant 0 : i32
    %c0_i32_0 = arith.constant 0 : i32
    %c0_i32_1 = arith.constant 0 : i32
    return %c0_i32, %c0_i32_0 : i32, i32
  }
  func.func @transform_7(%arg0: i32) -> (i32, i32) {
    %c0_i32 = arith.constant 0 : i32
    %c0_i32_0 = arith.constant 0 : i32
    %c0_i32_1 = arith.constant 0 : i32
    return %c0_i32, %c0_i32_0 : i32, i32
  }
  func.func @transform_8(%arg0: i32) -> (i32, i32) {
    %c0_i32 = arith.constant 0 : i32
    %c0_i32_0 = arith.constant 0 : i32
    %c0_i32_1 = arith.constant 0 : i32
    return %c0_i32, %c0_i32_0 : i32, i32
  }
  func.func @transform_9(%arg0: i32) -> (i32, i32) {
    %c0_i32 = arith.constant 0 : i32
    %c0_i32_0 = arith.constant 0 : i32
    %c0_i32_1 = arith.constant 0 : i32
    return %c0_i32, %c0_i32_0 : i32, i32
  }
  func.func @transform_10(%arg0: i32) -> (i32, i32) {
    %c0_i32 = arith.constant 0 : i32
    %c0_i32_0 = arith.constant 0 : i32
    %c0_i32_1 = arith.constant 0 : i32
    return %c0_i32, %c0_i32_0 : i32, i32
  }
  func.func @transform_11(%arg0: i32) -> (i32, i32) {
    %c0_i32 = arith.constant 0 : i32
    %c0_i32_0 = arith.constant 0 : i32
    %c0_i32_1 = arith.constant 0 : i32
    return %c0_i32, %c0_i32_0 : i32, i32
  }
  func.func @transform_12(%arg0: i32) -> (i32, i32) {
    %c0_i32 = arith.constant 0 : i32
    %c0_i32_0 = arith.constant 0 : i32
    %c0_i32_1 = arith.constant 0 : i32
    return %c0_i32, %c0_i32_0 : i32, i32
  }
  func.func @transform_13(%arg0: i32) -> (i32, i32) {
    %c0_i32 = arith.constant 0 : i32
    %c0_i32_0 = arith.constant 0 : i32
    return %c0_i32, %arg0 : i32, i32
  }
}

</mosaic_0001>

<bundles_post_ra>
// kernel: tpu_custom_call.1
= control target key start
LH: loop header
LB: loop body
LE: loop exit
PB: predicated region body
PF: predicated region fallthrough
CT: control target
= control target key end

     0   :  { %s894_s0 = inlined_call_operand.vmem [shape: s32[1,128], index: 0, kind: input, shape index: {}]   ;;  %s895_s1 = inlined_call_operand.vmem [shape: bf16[32,128], index: 1, kind: input, shape index: {}]   ;;  %s896_s2 = inlined_call_operand.vmem [shape: bf16[2,128], index: 2, kind: input, shape index: {}]   ;;  %s897_s3 = inlined_call_operand.vmem [shape: f32[1,128], index: 3, kind: input, shape index: {}]   ;;  %s898_s4 = inlined_call_operand.vmem [shape: bf16[8,16], index: 4, kind: input, shape index: {}]   ;;  %s899_s5 = inlined_call_operand.vmem [shape: bf16[32,32], index: 5, kind: input, shape index: {}]   ;;  %s900_s6 = inlined_call_operand.vmem [shape: bf16[32,8], index: 6, kind: input, shape index: {}]   ;;  %s901_s7 = inlined_call_operand.vmem [shape: bf16[32,2], index: 7, kind: input, shape index: {}]   ;;  %s902_s8 = inlined_call_operand.vmem [shape: f32[32,1], index: 8, kind: input, shape index: {}]   ;;  %s903_s9 = inlined_call_operand.vmem [shape: bf16[32,32], index: 9, kind: input, shape index: {}]   ;;  %s904_s10 = inlined_call_operand.vmem [shape: f32[32,1], index: 10, kind: input, shape index: {}]   ;;  %s905_s11 = inlined_call_operand.vmem [shape: bf16[1,32], index: 11, kind: input, shape index: {}]   ;;  %s906_s12 = inlined_call_operand.<no memory space> [shape: f32[1,1], index: 12, kind: input, shape index: {}]   ;;  %s907_s13 = inlined_call_operand.hbm [shape: f32[1,128], index: 13, kind: output, shape index: {}]  }
   0x1   :  { %v18_v0 = vstv %s906_s12 }
   0x2   :  { %19 = vst [vmem:[#allocation2] sm:$0x1] %v18_v0 }
   0x3   :  { %v48_v1 = vlaneseq  ;;  %v716_v2 = vmov 0.0   ;;  %v558_v3 = vld [vmem:[%s894_s0] ss:$0 sm:$0xff]  ;;  %vm717_vm0 = vmmov 0   ;;  %vm64_vm4 = vcmask 130048  }
   0x4   :  { %603 = vmatprep.subr.bf16.mxu0 %v716_v2  ;;  %605 = vmatprep.mubr.msk.bf16.mxu0 %vm717_vm0, %v716_v2  ;;  %v63_v6 = vld [vmem:[%s898_s4] sm:$0xf]  ;;  %v718_v7 = vmov 1.0|1.0  }
   0x5   :  { %v800_v4 = vshrl.u32 %v48_v1, 7 }
   0x7   :  { %v50_v5 = vadd.s32 8, %v800_v4  ;;  %vm56_vm1 = vcmp.eq.s32.totalorder %v800_v4, %v558_v3 }
   0x9   :  { %vm57_vm2 = vcmp.eq.s32.totalorder %v50_v5, %v558_v3 }
   0xa   :  { %vm561_vm3 = vmpackc.low %vm57_vm2, %vm56_vm1 }
   0xb   :  { %604 = vmatpush3.bf16.msk.msra.mxu0 %vm561_vm3, %v718_v7 }
   0xc   :  { %20 = vsyncpa [#allocation4], 0  ;;  %v662_v8 = vld [vmem:[%s900_s6] sm:$0xff]   ;;  %vm131_vm5 = vcmask 64512   ;;  %v350_v10 = vld [vmem:[%s902_s8 + $0x10] sm:$0xff]  ;;  %v719_v11 = vmov 0  }
   0xd   :  { %611 = vmatprep.mubr.msk.bf16.mxu1 %vm131_vm5, %v662_v8  ;;  %v348_v9 = vld [vmem:[%s902_s8] sm:$0xff]  ;;  %660 = vset.pattern.permute.xlu0 %v719_v11  ;;  %v349_v12 = vld [vmem:[%s902_s8 + $0x8] sm:$0xff]  ;;  %v351_v13 = vld [vmem:[%s902_s8 + $0x18] sm:$0xff]  ;;  %vm138_vm6 = vcmask 1043456   ;;  %vm213_vm7 = vcmask 261120   ;;  %vm291_vm8 = vcmask 1040384  }
   0xe   :  { %606 = vmatmul.mubr.msk.bf16.vlgmr.msra.gmra.mrb[0].mxu0 %vm64_vm4, %v63_v6  ;;  %661 = vset.pattern.permute.xlu1 %v719_v11  ;;  %v386_v14 = vld [vmem:[%s904_s10] sm:$0xff]  ;;  %v387_v15 = vld [vmem:[%s904_s10 + $0x8] sm:$0xff]  ;;  %v388_v16 = vld [vmem:[%s904_s10 + $0x10] sm:$0xff]  ;;  %vm284_vm9 = vcmask 15360   ;;  %v490_v11 = vsub.s32 0, %v800_v4 }
   0xf   :  { %354 = vperm.xlu0 %660, %v348_v9   ;;  %364 = vperm.xlu1 %661, %v350_v10   ;;  %v389_v17 = vld [vmem:[%s904_s10 + $0x18] sm:$0xff]  ;;  %v482_v18 = vld [vmem:[#allocation2] sm:$0x1]  ;;  %v663_v26 = vld [vmem:[%s900_s6 + $0x8] sm:$0xff]  }
  0x10   :  { %v664_v22 = vld [vmem:[%s895_s1] sm:$0xff]   ;;  %v665_v28 = vld [vmem:[%s895_s1 + $0x8] sm:$0xff]  }
  0x11   :  { %v666_v27 = vld [vmem:[%s899_s5] sm:$0xff]   ;;  %v667_v30 = vld [vmem:[%s899_s5 + $0x8] sm:$0xff]  }
  0x12   :  { %v273_v29 = vld [vmem:[%s896_s2] sm:$0x1]  ;;  %v669_v33 = vld [vmem:[%s901_s7 + $0x8] sm:$0xff]  }
  0x13   :  { %359 = vperm.xlu0 %660, %v349_v12   ;;  %369 = vperm.xlu1 %661, %v351_v13   ;;  %v668_v31 = vld [vmem:[%s901_s7] sm:$0xff]   ;;  %v293_v32 = vsel %vm291_vm8, %v273_v29, 0  ;;  %v671_v53 = vld [vmem:[%s903_s9 + $0x8] sm:$0xff]  }
  0x14   :  { %v670_v34 = vld [vmem:[%s903_s9] sm:$0xff]  }
  0x15   :  { %633 = vmatprep.mubr.msk.bf16.mxu0 %vm213_vm7, %v670_v34  ;;  %v481_v10 = vld [vmem:[%s905_s11] sm:$0x1]  ;;  %s720_s11 = smov [#allocation3]  }
  0x16   :  { %s550_s25 = sshll.u32 %s720_s11, 4  ;;  %s551_s25 = int_to_ptr.vmem [resolvable:$true] %s550_s25 }
  0x17   :  { %392 = vperm.xlu0 %660, %v386_v14   ;;  %397 = vperm.xlu1 %661, %v387_v15   ;;  %s692_s26 = scalar_lea.vmem %s551_s25, 16  ;;  %s696_s27 = scalar_lea.vmem %s551_s25, 32 }
  0x18   :  { %p693_p0 = scmp.ne.s32.totalorder %s551_s25, %s692_s26  ;;  %p697_p1 = scmp.lt.s32.totalorder %s551_s25, %s551_s25 }
  0x19   :  { %p698_p2 = scmp.lt.s32.totalorder %s696_s27, %s692_s26 }
  0x1b   :  { %402 = vperm.xlu0 %660, %v388_v16   ;;  %407 = vperm.xlu1 %661, %v389_v17   ;;  %p699_p3 = por %p698_p2, %p697_p1 }
  0x1d   :  { %p700_p4 = pnand %p699_p3, %p693_p0 }
  0x1f   :  { %485 = vperm.xlu0 %660, %v482_v18  }
  0x8e   :  { %v365_v35 = vpop.permute.xlu1 %364  ;;  %v355_v36 = vpop.permute.xlu0 %354 }
  0x92   :  { %v370_v40 = vpop.permute.xlu1 %369  ;;  %v360_v43 = vpop.permute.xlu0 %359 }
  0x96   :  { %v393_v54 = vpop.permute.xlu0 %392  ;;  %v398_v55 = vpop.permute.xlu1 %397 }
  0x9a   :  { %v403_v56 = vpop.permute.xlu0 %402  ;;  %v408_v60 = vpop.permute.xlu1 %407 }
  0x9e   :  { %v486_v12 = vpop.permute.xlu0 %485 }
  0x9f   :  { %v491_v13 = vrot.slane %v486_v12, %v490_v11 }
  0xe1   :  { %v102_v19 = vpop.f32.mrb[0].mxu0 }
  0xe2   :  { %v108_v20 = vpack.c.bf16 %v102_v19, %v102_v19  ;;  %v607_v21 = vpop.f32.mrb[1].mxu0 }
  0xe3   :  { %v105_v23 = vpop.f32.mrb[2].mxu0  ;;  %v541_v21 = vld [vmem:[%s897_s3] sm:$0x1] }
  0xe4   :  { %v608_v24 = vpop.f32.mrb[3].mxu0  ;;  %653 = vmatprep.subr.msk.bf16.mxu1 %vm138_vm6, %v108_v20  ;;  %v140_v25 = vsel %vm138_vm6, %v108_v20, 0 }
  0xe5   :  { %610 = vmatpush3.bf16.msra.mxu1 %v140_v25 }
  0xe6   :  { %615 = vmatprep.subr.bf16.mxu1 %v664_v22 }
  0xe8   :  { %612 = vmatmul.mubr.msk.bf16.vlgmr.msra.gmra.mrb[0].mxu1 %vm131_vm5, %v663_v26 }
  0xe9   :  { %616 = vmatpush3.bf16.msra.mxu1 %v664_v22  ;;  %619 = vmatprep.mubr.msk.bf16.mxu1 %vm213_vm7, %v666_v27 }
  0xea   :  { %617 = vmatprep.subr.bf16.mxu1 %v665_v28 }
  0xed   :  { %618 = vmatpush3.bf16.msra.mxu1 %v665_v28 }
  0xee   :  { %654 = vmatprep.subr.msk.bf16.mxu1 %vm291_vm8, %v273_v29 }
  0xf4   :  { %620 = vmatmul.mubr.msk.bf16.vlgmr.msra.gmra.mrb[0].mxu1 %vm213_vm7, %v667_v30 }
  0xf5   :  { %624 = vmatpush3.bf16.msra.mxu1 %v293_v32  ;;  %625 = vmatprep.mubr.msk.bf16.mxu1 %vm284_vm9, %v668_v31 }
 0x100   :  { %626 = vmatmul.mubr.msk.bf16.vlgmr.msra.gmra.mrb[0].mxu1 %vm284_vm9, %v669_v33 }
 0x1d3   :  { %v627_v37 = vpop.f32.mrb[0].mxu1 }
 0x1d4   :  { %v374_v38 = vadd.f32 %v627_v37, %v365_v35  ;;  %v329_v39 = vpop.f32.mrb[1].mxu1 }
 0x1d5   :  { %v372_v41 = vadd.f32 %v355_v36, %v329_v39  ;;  %v628_v42 = vpop.f32.mrb[2].mxu1 }
 0x1d6   :  { %672 = vtanh.f32 %v374_v38  ;;  %v375_v44 = vadd.f32 %v628_v42, %v370_v40  ;;  %v332_v45 = vpop.f32.mrb[3].mxu1 }
 0x1d7   :  { %674 = vtanh.f32 %v372_v41  ;;  %v373_v46 = vadd.f32 %v360_v43, %v332_v45 }
 0x1d8   :  { %676 = vtanh.f32 %v375_v44 }
 0x1d9   :  { %678 = vtanh.f32 %v373_v46 }
 0x1e0   :  { %v673_v47 = vpop.eup %672 }
 0x1e1   :  { %v675_v48 = vpop.eup %674 }
 0x1e2   :  { %v677_v49 = vpop.eup %676 }
 0x1e3   :  { %v679_v50 = vpop.eup %678  ;;  %v381_v51 = vpack.c.bf16 %v677_v49, %v673_v47 }
 0x1e4   :  { %v380_v52 = vpack.c.bf16 %v679_v50, %v675_v48 }
 0x1e6   :  { %629 = vmatprep.subr.bf16.mxu0 %v380_v52 }
 0x1e7   :  { %630 = vmatpush3.bf16.msra.mxu0 %v380_v52 }
 0x1e8   :  { %631 = vmatprep.subr.bf16.mxu0 %v381_v51 }
 0x1eb   :  { %632 = vmatpush3.bf16.msra.mxu0 %v381_v51 }
 0x1ec   :  { %637 = vmatprep.subr.bf16.mxu0 %v716_v2 }
 0x1ee   :  { %634 = vmatmul.mubr.msk.bf16.vlgmr.msra.gmra.mrb[4].mxu0 %vm213_vm7, %v671_v53 }
 0x1ef   :  { %641 = vmatprep.mubr.msk.bf16.mxu0 %vm717_vm0, %v716_v2 }
 0x2c1   :  { %v635_v57 = vpop.f32.mrb[4].mxu0 }
 0x2c2   :  { %v469_v58 = vadd.f32 %v635_v57, %v403_v56  ;;  %v460_v59 = vpop.f32.mrb[5].mxu0 }
 0x2c3   :  { %v461_v61 = vadd.f32 %v460_v59, %v393_v54  ;;  %v636_v62 = vpop.f32.mrb[6].mxu0 }
 0x2c4   :  { %680 = vtanh.f32 %v469_v58  ;;  %v472_v63 = vadd.f32 %v636_v62, %v408_v60  ;;  %v463_v0 = vpop.f32.mrb[7].mxu0 }
 0x2c5   :  { %682 = vtanh.f32 %v461_v61  ;;  %v464_v1 = vadd.f32 %v463_v0, %v398_v55 }
 0x2c6   :  { %684 = vtanh.f32 %v472_v63 }
 0x2c7   :  { %686 = vtanh.f32 %v464_v1 }
 0x2ce   :  { %v681_v3 = vpop.eup %680 }
 0x2cf   :  { %v683_v5 = vpop.eup %682 }
 0x2d0   :  { %v685_v6 = vpop.eup %684 }
 0x2d1   :  { %v687_v7 = vpop.eup %686  ;;  %v480_v8 = vpack.c.bf16 %v685_v6, %v681_v3 }
 0x2d2   :  { %v479_v9 = vpack.c.bf16 %v687_v7, %v683_v5 }
 0x2d4   :  { %638 = vmatpush3.bf16.msra.mxu0 %v479_v9 }
 0x2d5   :  { %639 = vmatprep.subr.bf16.mxu0 %v716_v2 }
 0x2d8   :  { %640 = vmatpush3.bf16.msra.mxu0 %v480_v8 }
 0x2db   :  { %642 = vmatmul.mubr.msk.bf16.vlgmr.msra.gmra.mrb[8].mxu0 %vm213_vm7, %v481_v10 }
 0x3ae   :  { %v529_v14 = vpop.f32.mrb[8].mxu0 }
 0x3af   :  { %v530_v15 = vadd.f32 %v529_v14, %v491_v13  ;;  %v643_v16 = vpop.f32.mrb[9].mxu0 }
 0x3b0   :  { %v532_v17 = vpop.f32.mrb[10].mxu0 }
 0x3b1   :  { %v583_v18 = vmul.f32 -1.442695, %v530_v15  ;;  %v644_v19 = vpop.f32.mrb[11].mxu0 }
 0x3b3   :  { %688 = vpow2.f32 %v583_v18 }
 0x3bd   :  { %v689_v20 = vpop.eup %688 }
 0x3be   :  { %v538_v2 = vadd.f32 1.0, %v689_v20 }
 0x3c0   :  { %690 = vrcp.f32 %v538_v2 }
 0x3ca   :  { %v691_v22 = vpop.eup %690 }
 0x3cb   :  { %v542_v4 = vmul.f32 %v691_v22, %v541_v21 }
 0x3cd   :  { %543 = vst [vmem:[#allocation3] sm:$0x1] %v542_v4 }
 0x3ce   :  { %703 = shalt.err (!%p700_p4)
}
 0x3cf   :  { %s704_s12 = scalar_lea.hbm %s907_s13, 16 }
 0x3d0   :  { %p705_p5 = scmp.ne.s32.totalorder %s907_s13, %s704_s12  ;;  %p708_p6 = scmp.lt.u32.totalorder %s704_s12, %s907_s13 }
 0x3d2   :  { %p710_p7 = pnand %p708_p6, %p705_p5 }
 0x3d4   :  { %713 = shalt.err (!%p710_p7)
}
 0x3d5   :  { %553 = dma.vmem_to_hbm [thread:$0]  %s551_s25, 16, %s907_s13, [#allocation4]  }
 0x3d6   :  { %714 = dma.done.wait [#allocation4], 16  }
 0x3d7   :  { %715 = vsyncadd [#allocation4], 4294967280 }
 0x3d8   :  { %557 = vsyncpa [#allocation4], 1 }

</bundles_post_ra>
